<compile_context>
chip_gen: v5e
topology: v5e:2x2
jax: 0.10.0
libtpu: 0.0.40
codegen_flags: <defaults>
</compile_context>

<pallas_src>
import functools

import jax
import jax.numpy as jnp
from jax.experimental import pallas as pl
from jax.experimental.pallas import tpu as pltpu


# ---------------------------------------------------------------------------
# Helpers.
# ---------------------------------------------------------------------------
def _round_up(x, m):
    return (x + m - 1) // m * m


# Measured fraction of HBM roofline vs tile width (see Pallas TPU reference).
_TILE_EFF = {128: 0.30, 256: 0.63, 512: 0.85, 1024: 0.87, 2048: 0.90}


def _dim_plan(d, cap=2048):
    """Return (padded_size, tile) for one logical graph dimension.

    The tile is a multiple of 128 (it serves both as the sublane tile of A's M
    axis and the lane tile of A's K axis). Large dims pick the tile minimizing
    (zero-padded bytes / bandwidth efficiency); never collapses to 128 unless
    that is genuinely best. Dims that would otherwise be a single block are
    split in two so the parallel grid axis can use both v7x TensorCores.
    """
    d128 = _round_up(max(int(d), 1), 128)
    if d128 <= cap:
        pad, tile = d128, d128                      # single full-extent block
    else:
        best, best_cost = 128, None
        c = 128
        while c <= cap:
            cost = _round_up(d128, c) / _TILE_EFF[c]
            if best_cost is None or cost < best_cost:
                best, best_cost = c, cost
            c *= 2
        tile = best
        pad = _round_up(d128, tile)
    # Prefer >=2 blocks along this dim (megacore) when it is big enough and the
    # halved tile is still a multiple of 128.
    if pad // tile < 2 and pad >= 512 and tile % 256 == 0:
        tile //= 2
    return pad, tile


def _vmem_cap_bytes():
    """Per-generation scoped-VMEM budget (leave headroom for compiler scratch)."""
    try:
        phys = int(pltpu.get_tpu_info().vmem_capacity_bytes)
    except Exception:
        phys = 128 * 1024 * 1024
    return int(min(phys - (8 << 20), 100 << 20))


# ---------------------------------------------------------------------------
# Pallas kernels: tiled (M,K) @ (K,D) -> (M,D), f32 accumulator, bf16 output.
# Grid = (M_pad//tm, K_pad//tk); the full (padded) hidden width D is one tile.
# ---------------------------------------------------------------------------
def _mm_kernel_resident_x(a_ref, x_ref, o_ref, acc_ref, *, tk):
    """X fully resident in VMEM (single buffer); slice the K chunk in-kernel."""
    k = pl.program_id(1)

    @pl.when(k == 0)
    def _():
        acc_ref[...] = jnp.zeros_like(acc_ref)

    start = pl.multiple_of(k * tk, tk)
    acc_ref[...] += jnp.dot(
        a_ref[...], x_ref[pl.ds(start, tk), :], preferred_element_type=jnp.float32
    )

    @pl.when(k == pl.num_programs(1) - 1)
    def _():
        o_ref[...] = acc_ref[...].astype(o_ref.dtype)


def _mm_kernel_blocked_x(a_ref, x_ref, o_ref, acc_ref):
    """Fallback: X streamed in (tk, D) blocks when it does not fit VMEM."""
    k = pl.program_id(1)

    @pl.when(k == 0)
    def _():
        acc_ref[...] = jnp.zeros_like(acc_ref)

    acc_ref[...] += jnp.dot(a_ref[...], x_ref[...], preferred_element_type=jnp.float32)

    @pl.when(k == pl.num_programs(1) - 1)
    def _():
        o_ref[...] = acc_ref[...].astype(o_ref.dtype)


def pallas_matmul_padded(a, x, *, tm, tk, out_dtype=jnp.bfloat16):
    """A @ X on the MXU. All operands are pre-padded: A is (M_pad, K_pad) with
    M_pad % tm == 0, K_pad % tk == 0; X is (K_pad, D_pad) with D_pad % 128 == 0."""
    M_pad, K_pad = a.shape
    K2, D_pad = x.shape
    assert K2 == K_pad and M_pad % tm == 0 and K_pad % tk == 0 and D_pad % 128 == 0

    a_item = jnp.dtype(a.dtype).itemsize
    x_item = jnp.dtype(x.dtype).itemsize
    o_item = jnp.dtype(out_dtype).itemsize

    cap = _vmem_cap_bytes()
    fixed = (
        2 * tm * tk * a_item        # double-buffered adjacency tiles (dominant stream)
        + 2 * tm * D_pad * o_item   # double-buffered output tile
        + tm * D_pad * 4            # f32 accumulator scratch
        + (2 << 20)                 # headroom for compiler-internal scratch
    )
    x_bytes = K_pad * D_pad * x_item
    x_resident = fixed + x_bytes <= cap

    if x_resident:
        # Whole X lives in VMEM, single buffer, no pipelining / no re-DMA.
        x_spec = pl.BlockSpec(memory_space=pltpu.MemorySpace.VMEM)
        kernel = functools.partial(_mm_kernel_resident_x, tk=tk)
        need = fixed + x_bytes
    else:
        x_spec = pl.BlockSpec((tk, D_pad), lambda i, k: (k, 0))
        kernel = _mm_kernel_blocked_x
        need = fixed + 2 * tk * D_pad * x_item

    vmem_limit = int(min(cap, max(need + (2 << 20), 32 << 20)))

    cost = pl.CostEstimate(
        flops=2 * M_pad * K_pad * D_pad,
        transcendentals=0,
        bytes_accessed=(M_pad * K_pad * a_item
                        + K_pad * D_pad * x_item
                        + M_pad * D_pad * o_item),
    )

    return pl.pallas_call(
        kernel,
        out_shape=jax.ShapeDtypeStruct((M_pad, D_pad), out_dtype),
        grid_spec=pltpu.PrefetchScalarGridSpec(
            num_scalar_prefetch=0,
            grid=(M_pad // tm, K_pad // tk),
            in_specs=[
                pl.BlockSpec((tm, tk), lambda i, k: (i, k)),
                x_spec,
            ],
            out_specs=pl.BlockSpec((tm, D_pad), lambda i, k: (i, 0)),
            scratch_shapes=[pltpu.VMEM((tm, D_pad), jnp.float32)],
        ),
        compiler_params=pltpu.CompilerParams(
            dimension_semantics=("parallel", "arbitrary"),
            vmem_limit_bytes=vmem_limit,
        ),
        cost_estimate=cost,
    )(a, x)


# ---------------------------------------------------------------------------
# Fused (jit) hop loops — embeddings stay padded + bf16 across hops.
# ---------------------------------------------------------------------------
@functools.partial(
    jax.jit,
    static_argnames=("n_hops", "u_pad", "i_pad", "d_pad", "u_tile", "i_tile"),
)
def _propagate_bipartite(r, rt, user_embed, item_embed, *,
                         n_hops, u_pad, i_pad, d_pad, u_tile, i_tile):
    """Hops using only the nonzero off-diagonal blocks of [[0,R],[R^T,0]]."""
    n_users, d = user_embed.shape
    n_items = item_embed.shape[0]
    u0 = jnp.pad(user_embed.astype(jnp.float32),
                 ((0, u_pad - n_users), (0, d_pad - d)))
    i0 = jnp.pad(item_embed.astype(jnp.float32),
                 ((0, i_pad - n_items), (0, d_pad - d)))

    u_cur = u0.astype(jnp.bfloat16)
    it_cur = i0.astype(jnp.bfloat16)
    us, its = [u0], [i0]
    for _ in range(n_hops):
        u_next = pallas_matmul_padded(r, it_cur, tm=u_tile, tk=i_tile)   # (u_pad, d_pad) bf16
        i_next = pallas_matmul_padded(rt, u_cur, tm=i_tile, tk=u_tile)   # (i_pad, d_pad) bf16
        u_cur, it_cur = u_next, i_next
        us.append(u_next)
        its.append(i_next)

    user_out = jnp.stack([e[:n_users, :d].astype(jnp.float32) for e in us], axis=1)
    item_out = jnp.stack([e[:n_items, :d].astype(jnp.float32) for e in its], axis=1)
    return user_out, item_out


@functools.partial(
    jax.jit, static_argnames=("n_hops", "n_users", "n_pad", "d_pad", "n_tile"),
)
def _propagate_dense(a, user_embed, item_embed, *,
                     n_hops, n_users, n_pad, d_pad, n_tile):
    """Fallback: hops with the full dense adjacency."""
    n_u, d = user_embed.shape
    n_i = item_embed.shape[0]
    ego = jnp.concatenate([user_embed, item_embed], axis=0).astype(jnp.float32)
    ego_p = jnp.pad(ego, ((0, n_pad - (n_u + n_i)), (0, d_pad - d)))

    agg = ego_p.astype(jnp.bfloat16)
    embs = [ego_p]
    for _ in range(n_hops):
        agg = pallas_matmul_padded(a, agg, tm=n_tile, tk=n_tile)   # (n_pad, d_pad) bf16
        embs.append(agg)

    stacked = jnp.stack([e[: n_u + n_i, :d].astype(jnp.float32) for e in embs], axis=1)
    return stacked[:n_users], stacked[n_users:]


# ---------------------------------------------------------------------------
# GraphConv module (LightGCN propagation).
# ---------------------------------------------------------------------------
class GraphConv:
    def __init__(self, n_hops, n_users, interact_mat,
                 edge_dropout_rate=0.5, mess_dropout_rate=0.1,
                 adjacency_dtype=jnp.bfloat16, force_dense=False):
        interact_mat = jnp.asarray(interact_mat, dtype=jnp.float32)
        self.interact_mat = interact_mat          # dense [N, N] normalized adjacency
        self.n_users = int(n_users)
        self.n_hops = int(n_hops)
        self.edge_dropout_rate = edge_dropout_rate
        self.mess_dropout_rate = mess_dropout_rate

        n_total = interact_mat.shape[0]
        n_items = n_total - self.n_users

        # Detect the bipartite block structure [[0, R], [R^T, 0]]; if present,
        # keep only the nonzero blocks (halves adjacency HBM traffic / MXU work).
        uu = interact_mat[: self.n_users, : self.n_users]
        ii = interact_mat[self.n_users:, self.n_users:]
        self._bipartite = (not force_dense) and bool(jnp.all(uu == 0)) and bool(jnp.all(ii == 0))

        if self._bipartite:
            self._u_pad, self._u_tile = _dim_plan(self.n_users)
            self._i_pad, self._i_tile = _dim_plan(n_items)
            r = interact_mat[: self.n_users, self.n_users:]
            # Pad ONCE; bf16 for MXU-native rate and half the HBM traffic.
            self._r = jnp.pad(
                r, ((0, self._u_pad - self.n_users), (0, self._i_pad - n_items))
            ).astype(adjacency_dtype)
            self._rt = jnp.pad(
                r.T, ((0, self._i_pad - n_items), (0, self._u_pad - self.n_users))
            ).astype(adjacency_dtype)
            self._a = None
        else:
            self._n_pad, self._n_tile = _dim_plan(n_total)
            self._a = jnp.pad(
                interact_mat, ((0, self._n_pad - n_total), (0, self._n_pad - n_total))
            ).astype(adjacency_dtype)
            self._r = self._rt = None

    def forward(self, user_embed, item_embed, mess_dropout=True, edge_dropout=True):
        # TODO(synk): mess_dropout / edge_dropout (stochastic masking) are not
        # implemented; this reproduces the deterministic eval-mode forward.
        user_embed = jnp.asarray(user_embed, dtype=jnp.float32)
        item_embed = jnp.asarray(item_embed, dtype=jnp.float32)
        d_pad = _round_up(user_embed.shape[1], 128)

        if self._bipartite:
            return _propagate_bipartite(
                self._r, self._rt, user_embed, item_embed,
                n_hops=self.n_hops, u_pad=self._u_pad, i_pad=self._i_pad,
                d_pad=d_pad, u_tile=self._u_tile, i_tile=self._i_tile)
        return _propagate_dense(
            self._a, user_embed, item_embed,
            n_hops=self.n_hops, n_users=self.n_users,
            n_pad=self._n_pad, d_pad=d_pad, n_tile=self._n_tile)

    __call__ = forward


# ---------------------------------------------------------------------------
# Deterministic synthetic setup + run.
# ---------------------------------------------------------------------------
def build_normalized_adjacency(key, n_users, n_items, density=0.05):
    """Symmetric-normalized bipartite adjacency [[0, R], [R^T, 0]], dense."""
    n = n_users + n_items
    r = jax.random.bernoulli(key, p=density, shape=(n_users, n_items)).astype(jnp.float32)
    adj = jnp.zeros((n, n), dtype=jnp.float32)
    adj = adj.at[:n_users, n_users:].set(r)
    adj = adj.at[n_users:, :n_users].set(r.T)
    deg = jnp.sum(adj, axis=1)
    d_inv_sqrt = jnp.where(deg > 0, 1.0 / jnp.sqrt(deg), 0.0)
    return adj * d_inv_sqrt[:, None] * d_inv_sqrt[None, :]


if __name__ == "__main__":
    n_users, n_items, hidden, n_hops = 64, 192, 128, 3

    key = jax.random.PRNGKey(0)
    k_adj, k_u, k_i = jax.random.split(key, 3)

    interact_mat = build_normalized_adjacency(k_adj, n_users, n_items)
    user_embed = jax.random.normal(k_u, (n_users, hidden), dtype=jnp.float32)
    item_embed = jax.random.normal(k_i, (n_items, hidden), dtype=jnp.float32)

    gcn = GraphConv(n_hops=n_hops, n_users=n_users, interact_mat=interact_mat)
    user_out, item_out = gcn(user_embed, item_embed, mess_dropout=False, edge_dropout=False)
    user_out = jax.block_until_ready(user_out)
    item_out = jax.block_until_ready(item_out)

    assert user_out.shape == (n_users, n_hops + 1, hidden)
    assert item_out.shape == (n_items, n_hops + 1, hidden)

    # Reference 1: identical numerics to the kernel (bf16 adjacency, bf16 hop
    # carries, f32 MXU accumulation, f32 ego entry).
    r_bf = interact_mat[:n_users, n_users:].astype(jnp.bfloat16)
    rt_bf = interact_mat[n_users:, :n_users].astype(jnp.bfloat16)
    u_cur = user_embed.astype(jnp.bfloat16)
    it_cur = item_embed.astype(jnp.bfloat16)
    ref_u, ref_i = [user_embed], [item_embed]
    for _ in range(n_hops):
        u_next = jnp.dot(r_bf, it_cur, preferred_element_type=jnp.float32).astype(jnp.bfloat16)
        i_next = jnp.dot(rt_bf, u_cur, preferred_element_type=jnp.float32).astype(jnp.bfloat16)
        u_cur, it_cur = u_next, i_next
        ref_u.append(u_next.astype(jnp.float32))
        ref_i.append(i_next.astype(jnp.float32))
    ref_user = jnp.stack(ref_u, axis=1)
    ref_item = jnp.stack(ref_i, axis=1)
    assert jnp.allclose(user_out, ref_user, atol=2e-2, rtol=2e-2)
    assert jnp.allclose(item_out, ref_item, atol=2e-2, rtol=2e-2)

    # Reference 2: original full-precision f32 semantics; loose bound that only
    # catches gross structural errors (bf16 quantization noise ~1e-2).
    ego = jnp.concatenate([user_embed, item_embed], axis=0)
    agg = ego
    f32_embs = [ego]
    for _ in range(n_hops):
        agg = interact_mat @ agg
        f32_embs.append(agg)
    f32_ref = jnp.stack(f32_embs, axis=1)
    full = jnp.concatenate([user_out, item_out], axis=0)
    assert float(jnp.max(jnp.abs(full - f32_ref))) < 0.2

    # Dense-path sanity check (non-bipartite kernel path) — mathematically the
    # same result since the diagonal blocks are exactly zero.
    gcn_dense = GraphConv(n_hops=n_hops, n_users=n_users, interact_mat=interact_mat,
                          force_dense=True)
    u_dense, i_dense = gcn_dense(user_embed, item_embed,
                                 mess_dropout=False, edge_dropout=False)
    u_dense = jax.block_until_ready(u_dense)
    i_dense = jax.block_until_ready(i_dense)
    assert jnp.allclose(u_dense, user_out, atol=2e-2, rtol=2e-2)
    assert jnp.allclose(i_dense, item_out, atol=2e-2, rtol=2e-2)

    print("KERNEL_OK")
</pallas_src>

<mosaic_0001>
module attributes {stable_mosaic.version = 11 : i64} {
  func.func @_mm_kernel_resident_x(%arg0: i32, %arg1: i32, %arg2: memref<256x128xbf16, #tpu.memory_space<vmem>>, %arg3: memref<128x128xbf16, #tpu.memory_space<vmem>>, %arg4: memref<256x128xbf16, #tpu.memory_space<vmem>>, %arg5: memref<256x128xf32, #tpu.memory_space<vmem>>) attributes {dimension_semantics = [#tpu.dimension_semantics<parallel>, #tpu.dimension_semantics<arbitrary>], iteration_bounds = array<i64: 1, 1>, scalar_prefetch = 0 : i64, scratch_operands = 1 : i64, tpu.core_type = #tpu.core_type<tc>, window_params = [{transform_indices = @transform_0, window_bounds = array<i64: 256, 128>}, {pipeline_mode = #tpu.pipeline_mode<synchronous>, transform_indices = @transform_1, window_bounds = array<i64: 128, 128>}, {transform_indices = @transform_2, window_bounds = array<i64: 256, 128>}]} {
    %c0_i32 = arith.constant 0 : i32
    %0 = arith.cmpi eq, %arg1, %c0_i32 : i32
    %1 = arith.extui %0 : i1 to i32
    %c0_i32_0 = arith.constant 0 : i32
    %2 = arith.cmpi ne, %1, %c0_i32_0 : i32
    scf.if %2 {
      %cst_9 = arith.constant 0.000000e+00 : f32
      %15 = vector.broadcast %cst_9 : f32 to vector<256x128xf32>
      %c0_10 = arith.constant 0 : index
      %c0_11 = arith.constant 0 : index
      %16 = vector.load %arg5[%c0_10, %c0_11] : memref<256x128xf32, #tpu.memory_space<vmem>>, vector<256x128xf32>
      tpu.vector_store %arg5[%c0_10, %c0_11], %15 {strides = array<i32>} : memref<256x128xf32, #tpu.memory_space<vmem>>, vector<256x128xf32>,
    } else {
    }
    %c128_i32 = arith.constant 128 : i32
    %3 = arith.muli %arg1, %c128_i32 : i32
    %4 = tpu.assume_multiple %3, 128 : i32
    %c0 = arith.constant 0 : index
    %c0_1 = arith.constant 0 : index
    %5 = vector.load %arg5[%c0, %c0_1] : memref<256x128xf32, #tpu.memory_space<vmem>>, vector<256x128xf32>
    %c0_2 = arith.constant 0 : index
    %c0_3 = arith.constant 0 : index
    %6 = vector.load %arg2[%c0_2, %c0_3] : memref<256x128xbf16, #tpu.memory_space<vmem>>, vector<256x128xbf16>
    %7 = arith.index_cast %4 : i32 to index
    %c0_4 = arith.constant 0 : index
    %8 = vector.load %arg3[%7, %c0_4] : memref<128x128xbf16, #tpu.memory_space<vmem>>, vector<128x128xbf16>
    %cst = arith.constant dense<0.000000e+00> : vector<256x128xf32>
    %9 = tpu.matmul %6, %8, %cst {dimension_numbers = #tpu.dot_dimension_numbers<[1], [0], [0], [1], [0, 0, 1, 1], [], []>} : vector<256x128xbf16>, vector<128x128xbf16>, vector<256x128xf32> -> vector<256x128xf32>
    %10 = arith.addf %5, %9 : vector<256x128xf32>
    %c0_5 = arith.constant 0 : index
    %c0_6 = arith.constant 0 : index
    %11 = vector.load %arg5[%c0_5, %c0_6] : memref<256x128xf32, #tpu.memory_space<vmem>>, vector<256x128xf32>
    tpu.vector_store %arg5[%c0_5, %c0_6], %10 {strides = array<i32>} : memref<256x128xf32, #tpu.memory_space<vmem>>, vector<256x128xf32>,
    %c0_i32_7 = arith.constant 0 : i32
    %12 = arith.cmpi eq, %arg1, %c0_i32_7 : i32
    %13 = arith.extui %12 : i1 to i32
    %c0_i32_8 = arith.constant 0 : i32
    %14 = arith.cmpi ne, %13, %c0_i32_8 : i32
    scf.if %14 {
      %c0_9 = arith.constant 0 : index
      %c0_10 = arith.constant 0 : index
      %15 = vector.load %arg5[%c0_9, %c0_10] : memref<256x128xf32, #tpu.memory_space<vmem>>, vector<256x128xf32>
      %16 = arith.truncf %15 : vector<256x128xf32> to vector<256x128xbf16>
      %c0_11 = arith.constant 0 : index
      %c0_12 = arith.constant 0 : index
      %17 = vector.load %arg4[%c0_11, %c0_12] : memref<256x128xbf16, #tpu.memory_space<vmem>>, vector<256x128xbf16>
      tpu.vector_store %arg4[%c0_11, %c0_12], %16 {strides = array<i32>} : memref<256x128xbf16, #tpu.memory_space<vmem>>, vector<256x128xbf16>,
    } else {
    }
    return
  }
  func.func @transform_0(%arg0: i32, %arg1: i32) -> (i32, i32) {
    %c0_i32 = arith.constant 0 : i32
    return %arg0, %arg1 : i32, i32
  }
  func.func @transform_1(%arg0: i32, %arg1: i32) -> (i32, i32) {
    %c0_i32 = arith.constant 0 : i32
    %c0_i32_0 = arith.constant 0 : i32
    %c0_i32_1 = arith.constant 0 : i32
    return %c0_i32, %c0_i32_0 : i32, i32
  }
  func.func @transform_2(%arg0: i32, %arg1: i32) -> (i32, i32) {
    %c0_i32 = arith.constant 0 : i32
    %c0_i32_0 = arith.constant 0 : i32
    return %arg0, %c0_i32 : i32, i32
  }
}

module attributes {stable_mosaic.version = 11 : i64} {
  func.func @_mm_kernel_resident_x(%arg0: i32, %arg1: i32, %arg2: memref<128x256xbf16, #tpu.memory_space<vmem>>, %arg3: memref<256x128xbf16, #tpu.memory_space<vmem>>, %arg4: memref<128x128xbf16, #tpu.memory_space<vmem>>, %arg5: memref<128x128xf32, #tpu.memory_space<vmem>>) attributes {dimension_semantics = [#tpu.dimension_semantics<parallel>, #tpu.dimension_semantics<arbitrary>], iteration_bounds = array<i64: 1, 1>, scalar_prefetch = 0 : i64, scratch_operands = 1 : i64, tpu.core_type = #tpu.core_type<tc>, window_params = [{transform_indices = @transform_0, window_bounds = array<i64: 128, 256>}, {pipeline_mode = #tpu.pipeline_mode<synchronous>, transform_indices = @transform_1, window_bounds = array<i64: 256, 128>}, {transform_indices = @transform_2, window_bounds = array<i64: 128, 128>}]} {
    %c0_i32 = arith.constant 0 : i32
    %0 = arith.cmpi eq, %arg1, %c0_i32 : i32
    %1 = arith.extui %0 : i1 to i32
    %c0_i32_0 = arith.constant 0 : i32
    %2 = arith.cmpi ne, %1, %c0_i32_0 : i32
    scf.if %2 {
      %cst_9 = arith.constant 0.000000e+00 : f32
      %15 = vector.broadcast %cst_9 : f32 to vector<128x128xf32>
      %c0_10 = arith.constant 0 : index
      %c0_11 = arith.constant 0 : index
      %16 = vector.load %arg5[%c0_10, %c0_11] : memref<128x128xf32, #tpu.memory_space<vmem>>, vector<128x128xf32>
      tpu.vector_store %arg5[%c0_10, %c0_11], %15 {strides = array<i32>} : memref<128x128xf32, #tpu.memory_space<vmem>>, vector<128x128xf32>,
    } else {
    }
    %c256_i32 = arith.constant 256 : i32
    %3 = arith.muli %arg1, %c256_i32 : i32
    %4 = tpu.assume_multiple %3, 256 : i32
    %c0 = arith.constant 0 : index
    %c0_1 = arith.constant 0 : index
    %5 = vector.load %arg5[%c0, %c0_1] : memref<128x128xf32, #tpu.memory_space<vmem>>, vector<128x128xf32>
    %c0_2 = arith.constant 0 : index
    %c0_3 = arith.constant 0 : index
    %6 = vector.load %arg2[%c0_2, %c0_3] : memref<128x256xbf16, #tpu.memory_space<vmem>>, vector<128x256xbf16>
    %7 = arith.index_cast %4 : i32 to index
    %c0_4 = arith.constant 0 : index
    %8 = vector.load %arg3[%7, %c0_4] : memref<256x128xbf16, #tpu.memory_space<vmem>>, vector<256x128xbf16>
    %cst = arith.constant dense<0.000000e+00> : vector<128x128xf32>
    %9 = tpu.matmul %6, %8, %cst {dimension_numbers = #tpu.dot_dimension_numbers<[1], [0], [0], [1], [0, 0, 1, 1], [], []>} : vector<128x256xbf16>, vector<256x128xbf16>, vector<128x128xf32> -> vector<128x128xf32>
    %10 = arith.addf %5, %9 : vector<128x128xf32>
    %c0_5 = arith.constant 0 : index
    %c0_6 = arith.constant 0 : index
    %11 = vector.load %arg5[%c0_5, %c0_6] : memref<128x128xf32, #tpu.memory_space<vmem>>, vector<128x128xf32>
    tpu.vector_store %arg5[%c0_5, %c0_6], %10 {strides = array<i32>} : memref<128x128xf32, #tpu.memory_space<vmem>>, vector<128x128xf32>,
    %c0_i32_7 = arith.constant 0 : i32
    %12 = arith.cmpi eq, %arg1, %c0_i32_7 : i32
    %13 = arith.extui %12 : i1 to i32
    %c0_i32_8 = arith.constant 0 : i32
    %14 = arith.cmpi ne, %13, %c0_i32_8 : i32
    scf.if %14 {
      %c0_9 = arith.constant 0 : index
      %c0_10 = arith.constant 0 : index
      %15 = vector.load %arg5[%c0_9, %c0_10] : memref<128x128xf32, #tpu.memory_space<vmem>>, vector<128x128xf32>
      %16 = arith.truncf %15 : vector<128x128xf32> to vector<128x128xbf16>
      %c0_11 = arith.constant 0 : index
      %c0_12 = arith.constant 0 : index
      %17 = vector.load %arg4[%c0_11, %c0_12] : memref<128x128xbf16, #tpu.memory_space<vmem>>, vector<128x128xbf16>
      tpu.vector_store %arg4[%c0_11, %c0_12], %16 {strides = array<i32>} : memref<128x128xbf16, #tpu.memory_space<vmem>>, vector<128x128xbf16>,
    } else {
    }
    return
  }
  func.func @transform_0(%arg0: i32, %arg1: i32) -> (i32, i32) {
    %c0_i32 = arith.constant 0 : i32
    return %arg0, %arg1 : i32, i32
  }
  func.func @transform_1(%arg0: i32, %arg1: i32) -> (i32, i32) {
    %c0_i32 = arith.constant 0 : i32
    %c0_i32_0 = arith.constant 0 : i32
    %c0_i32_1 = arith.constant 0 : i32
    return %c0_i32, %c0_i32_0 : i32, i32
  }
  func.func @transform_2(%arg0: i32, %arg1: i32) -> (i32, i32) {
    %c0_i32 = arith.constant 0 : i32
    %c0_i32_0 = arith.constant 0 : i32
    return %arg0, %c0_i32 : i32, i32
  }
}

</mosaic_0001>

<bundles_post_ra>
// kernel: _propagate_bipartite.8
= control target key start
LH: loop header
LB: loop body
LE: loop exit
PB: predicated region body
PF: predicated region fallthrough
CT: control target
= control target key end

     0   :  { %s869_s1 = inlined_call_operand.vmem [shape: bf16[256,128], index: 1, kind: input, shape index: {}]   ;;  %s870_s0 = inlined_call_operand.vmem [shape: bf16[128,256], index: 0, kind: input, shape index: {}]   ;;  %s871_s2 = inlined_call_operand.vmem [shape: bf16[128,128], index: 2, kind: output, shape index: {}]  }
   0x1   :  { %v614_v0 = vld [vmem:[%s869_s1 + $0x38] sm:$0xff]  ;;  %v613_v2 = vld [vmem:[%s869_s1 + $0x30] sm:$0xff]  ;;  %v612_v4 = vld [vmem:[%s869_s1 + $0x28] sm:$0xff] }
   0x2   :  { %v622_v1 = vld [vmem:[%s869_s1 + $0x78] sm:$0xff]  ;;  %276 = vmatpush.bf16.msra.mxu0 %v614_v0  ;;  %670 = vmatpush.bf16.msra.mxu2 %v614_v0  ;;  %v621_v3 = vld [vmem:[%s869_s1 + $0x70] sm:$0xff]  ;;  %v620_v5 = vld [vmem:[%s869_s1 + $0x68] sm:$0xff] }
   0x3   :  { %325 = vmatpush.bf16.msra.mxu1 %v622_v1  ;;  %678 = vmatpush.bf16.msra.mxu3 %v622_v1  ;;  %v611_v6 = vld [vmem:[%s869_s1 + $0x20] sm:$0xff]  ;;  %v610_v8 = vld [vmem:[%s869_s1 + $0x18] sm:$0xff]  ;;  %v609_v10 = vld [vmem:[%s869_s1 + $0x10] sm:$0xff] }
   0x4   :  { %v619_v7 = vld [vmem:[%s869_s1 + $0x60] sm:$0xff]  ;;  %v618_v9 = vld [vmem:[%s869_s1 + $0x58] sm:$0xff]  ;;  %v617_v11 = vld [vmem:[%s869_s1 + $0x50] sm:$0xff] }
   0x5   :  { %v608_v12 = vld [vmem:[%s869_s1 + $0x8] sm:$0xff]  ;;  %v607_v14 = vld [vmem:[%s869_s1] sm:$0xff]  ;;  %v473_v28 = vld [vmem:[%s870_s0 + $0x10] sm:$0xf] }
   0x6   :  { %277 = vmatpush.bf16.msra.mxu0 %v613_v2  ;;  %671 = vmatpush.bf16.msra.mxu2 %v613_v2  ;;  %v616_v13 = vld [vmem:[%s869_s1 + $0x48] sm:$0xff]  ;;  %v615_v15 = vld [vmem:[%s869_s1 + $0x40] sm:$0xff]  ;;  %v594_v29 = vld [vmem:[%s870_s0 + $0x14] sm:$0xf0] }
   0x7   :  { %326 = vmatpush.bf16.msra.mxu1 %v621_v3  ;;  %679 = vmatpush.bf16.msra.mxu3 %v621_v3  ;;  %v465_v16 = vld [vmem:[%s870_s0] sm:$0xf]  ;;  %v592_v17 = vld [vmem:[%s870_s0 + $0x4] sm:$0xf0]  ;;  %v591_v20 = vld [vmem:[%s870_s0 + $0x4] sm:$0xf]  ;;  %v474_v36 = vor.u32 %v594_v29, %v473_v28 }
   0x8   :  { %v497_v18 = vld [vmem:[%s870_s0 + $0x40] sm:$0xf]  ;;  %v600_v19 = vld [vmem:[%s870_s0 + $0x44] sm:$0xf0]  ;;  %v467_v21 = vld [vmem:[%s870_s0 + $0x8] sm:$0xf0]  ;;  %v466_v24 = vor.u32 %v592_v17, %v465_v16 }
   0x9   :  { %v599_v22 = vld [vmem:[%s870_s0 + $0x44] sm:$0xf]  ;;  %v499_v23 = vld [vmem:[%s870_s0 + $0x48] sm:$0xf0]  ;;  %v498_v25 = vor.u32 %v600_v19, %v497_v18  ;;  %v470_v26 = vor.u32 %v591_v20, %v467_v21  ;;  %v505_v30 = vld [vmem:[%s870_s0 + $0x50] sm:$0xf] }
   0xa   :  { %278 = vmatpush.bf16.msra.mxu0 %v612_v4  ;;  %672 = vmatpush.bf16.msra.mxu2 %v612_v4  ;;  %v502_v27 = vor.u32 %v599_v22, %v499_v23  ;;  %v602_v31 = vld [vmem:[%s870_s0 + $0x54] sm:$0xf0]  ;;  %v593_v32 = vld [vmem:[%s870_s0 + $0x14] sm:$0xf]  ;;  %v475_v33 = vld [vmem:[%s870_s0 + $0x18] sm:$0xf0] }
   0xb   :  { %327 = vmatpush.bf16.msra.mxu1 %v620_v5  ;;  %680 = vmatpush.bf16.msra.mxu3 %v620_v5  ;;  %v601_v34 = vld [vmem:[%s870_s0 + $0x54] sm:$0xf]  ;;  %v507_v35 = vld [vmem:[%s870_s0 + $0x58] sm:$0xf0]  ;;  %v506_v37 = vor.u32 %v602_v31, %v505_v30  ;;  %v478_v38 = vor.u32 %v593_v32, %v475_v33  ;;  %v481_v40 = vld [vmem:[%s870_s0 + $0x20] sm:$0xf] }
   0xc   :  { %v510_v39 = vor.u32 %v601_v34, %v507_v35  ;;  %v596_v41 = vld [vmem:[%s870_s0 + $0x24] sm:$0xf0]  ;;  %v513_v42 = vld [vmem:[%s870_s0 + $0x60] sm:$0xf]  ;;  %v595_v44 = vld [vmem:[%s870_s0 + $0x24] sm:$0xf] }
   0xd   :  { %v604_v43 = vld [vmem:[%s870_s0 + $0x64] sm:$0xf0]  ;;  %v483_v45 = vld [vmem:[%s870_s0 + $0x28] sm:$0xf0]  ;;  %v603_v46 = vld [vmem:[%s870_s0 + $0x64] sm:$0xf]  ;;  %v482_v48 = vor.u32 %v596_v41, %v481_v40 }
   0xe   :  { %279 = vmatpush.bf16.msra.mxu0 %v611_v6  ;;  %673 = vmatpush.bf16.msra.mxu2 %v611_v6  ;;  %v515_v47 = vld [vmem:[%s870_s0 + $0x68] sm:$0xf0]  ;;  %v514_v49 = vor.u32 %v604_v43, %v513_v42  ;;  %v486_v50 = vor.u32 %v595_v44, %v483_v45  ;;  %v489_v52 = vld [vmem:[%s870_s0 + $0x30] sm:$0xf]  ;;  %v598_v53 = vld [vmem:[%s870_s0 + $0x34] sm:$0xf0] }
   0xf   :  { %328 = vmatpush.bf16.msra.mxu1 %v619_v7  ;;  %681 = vmatpush.bf16.msra.mxu3 %v619_v7  ;;  %v518_v51 = vor.u32 %v603_v46, %v515_v47  ;;  %v521_v54 = vld [vmem:[%s870_s0 + $0x70] sm:$0xf]  ;;  %v606_v55 = vld [vmem:[%s870_s0 + $0x74] sm:$0xf0]  ;;  %v597_v56 = vld [vmem:[%s870_s0 + $0x34] sm:$0xf]  ;;  %v490_v60 = vor.u32 %v598_v53, %v489_v52 }
  0x10   :  { %v491_v57 = vld [vmem:[%s870_s0 + $0x38] sm:$0xf0]  ;;  %v605_v58 = vld [vmem:[%s870_s0 + $0x74] sm:$0xf]  ;;  %v522_v61 = vor.u32 %v606_v55, %v521_v54 }
  0x11   :  { %v523_v59 = vld [vmem:[%s870_s0 + $0x78] sm:$0xf0]  ;;  %v494_v62 = vor.u32 %v597_v56, %v491_v57 }
  0x12   :  { %280 = vmatpush.bf16.msra.mxu0 %v610_v8  ;;  %674 = vmatpush.bf16.msra.mxu2 %v610_v8  ;;  %v526_v63 = vor.u32 %v605_v58, %v523_v59 }
  0x13   :  { %329 = vmatpush.bf16.msra.mxu1 %v618_v9  ;;  %682 = vmatpush.bf16.msra.mxu3 %v618_v9 }
  0x16   :  { %281 = vmatpush.bf16.msra.mxu0 %v609_v10  ;;  %675 = vmatpush.bf16.msra.mxu2 %v609_v10 }
  0x17   :  { %330 = vmatpush.bf16.msra.mxu1 %v617_v11  ;;  %683 = vmatpush.bf16.msra.mxu3 %v617_v11 }
  0x1a   :  { %282 = vmatpush.bf16.msra.mxu0 %v608_v12  ;;  %676 = vmatpush.bf16.msra.mxu2 %v608_v12 }
  0x1b   :  { %331 = vmatpush.bf16.msra.mxu1 %v616_v13  ;;  %684 = vmatpush.bf16.msra.mxu3 %v616_v13 }
  0x1e   :  { %283 = vmatpush.bf16.msra.mxu0 %v607_v14  ;;  %677 = vmatpush.bf16.msra.mxu2 %v607_v14 }
  0x1f   :  { %332 = vmatpush.bf16.msra.mxu1 %v615_v15  ;;  %685 = vmatpush.bf16.msra.mxu3 %v615_v15 }
  0x21   :  { %284 = vmatmul.bf16.vlgmr.msra.gmra.mxu0 %v466_v24  ;;  %304 = vmatmul.bf16.vlgmr.msra.gmra.mxu2 %v498_v25 }
  0x22   :  { %333 = vmatmul.bf16.vlgmr.msra.gmra.mxu1 %v470_v26  ;;  %353 = vmatmul.bf16.vlgmr.msra.gmra.mxu3 %v502_v27 }
  0x31   :  { %289 = vmatmul.bf16.gmra.mxu0 %v474_v36  ;;  %309 = vmatmul.bf16.gmra.mxu2 %v506_v37 }
  0x32   :  { %338 = vmatmul.bf16.gmra.mxu1 %v478_v38  ;;  %358 = vmatmul.bf16.gmra.mxu3 %v510_v39 }
  0x41   :  { %294 = vmatmul.bf16.gmra.mxu0 %v482_v48  ;;  %314 = vmatmul.bf16.gmra.mxu2 %v514_v49 }
  0x42   :  { %343 = vmatmul.bf16.gmra.mxu1 %v486_v50  ;;  %363 = vmatmul.bf16.gmra.mxu3 %v518_v51 }
  0x51   :  { %299 = vmatmul.bf16.gmra.mxu0 %v490_v60  ;;  %319 = vmatmul.bf16.gmra.mxu2 %v522_v61 }
  0x52   :  { %348 = vmatmul.bf16.gmra.mxu1 %v494_v62  ;;  %368 = vmatmul.bf16.gmra.mxu3 %v526_v63 }
  0x9e   :  { %v285_v0 = vpop.f32.mrf.mxu0 }
  0x9f   :  { %v334_v1 = vpop.f32.mrf.mxu1 }
  0xa0   :  { %v335_v6 = vadd.f32 %v334_v1, %v285_v0 }
  0xa4   :  { %v305_v2 = vpop.f32.mrf.mxu2 }
  0xa5   :  { %v354_v3 = vpop.f32.mrf.mxu3 }
  0xa6   :  { %v287_v4 = vpop.f32.mrf.mxu0  ;;  %v355_v11 = vadd.f32 %v354_v3, %v305_v2 }
  0xa7   :  { %v336_v5 = vpop.f32.mrf.mxu1 }
  0xa8   :  { %v337_v7 = vadd.f32 %v336_v5, %v287_v4 }
  0xaa   :  { %v626_v8 = vpack.c.bf16 %v337_v7, %v335_v6 }
  0xac   :  { %627 = vst [vmem:[%s871_s2] sm:$0xff] %v626_v8   ;;  %v307_v9 = vpop.f32.mrf.mxu2 }
  0xad   :  { %v356_v10 = vpop.f32.mrf.mxu3 }
  0xae   :  { %v357_v12 = vadd.f32 %v356_v10, %v307_v9  ;;  %v290_v13 = vpop.f32.mrf.mxu0 }
  0xaf   :  { %v339_v14 = vpop.f32.mrf.mxu1 }
  0xb0   :  { %v646_v15 = vpack.c.bf16 %v357_v12, %v355_v11  ;;  %v340_v20 = vadd.f32 %v339_v14, %v290_v13 }
  0xb2   :  { %666 = vst [vmem:[%s871_s2 + $0x20] sm:$0xff] %v646_v15  }
  0xb4   :  { %v310_v16 = vpop.f32.mrf.mxu2 }
  0xb5   :  { %v359_v17 = vpop.f32.mrf.mxu3 }
  0xb6   :  { %v292_v18 = vpop.f32.mrf.mxu0  ;;  %v360_v25 = vadd.f32 %v359_v17, %v310_v16 }
  0xb7   :  { %v341_v19 = vpop.f32.mrf.mxu1 }
  0xb8   :  { %v342_v21 = vadd.f32 %v341_v19, %v292_v18 }
  0xba   :  { %v631_v22 = vpack.c.bf16 %v342_v21, %v340_v20 }
  0xbc   :  { %663 = vst [vmem:[%s871_s2 + $0x8] sm:$0xff] %v631_v22   ;;  %v312_v23 = vpop.f32.mrf.mxu2 }
  0xbd   :  { %v361_v24 = vpop.f32.mrf.mxu3 }
  0xbe   :  { %v362_v26 = vadd.f32 %v361_v24, %v312_v23  ;;  %v295_v27 = vpop.f32.mrf.mxu0 }
  0xbf   :  { %v344_v28 = vpop.f32.mrf.mxu1 }
  0xc0   :  { %v651_v29 = vpack.c.bf16 %v362_v26, %v360_v25  ;;  %v345_v34 = vadd.f32 %v344_v28, %v295_v27 }
  0xc2   :  { %667 = vst [vmem:[%s871_s2 + $0x28] sm:$0xff] %v651_v29  }
  0xc4   :  { %v315_v30 = vpop.f32.mrf.mxu2 }
  0xc5   :  { %v364_v31 = vpop.f32.mrf.mxu3 }
  0xc6   :  { %v297_v32 = vpop.f32.mrf.mxu0  ;;  %v365_v39 = vadd.f32 %v364_v31, %v315_v30 }
  0xc7   :  { %v346_v33 = vpop.f32.mrf.mxu1 }
  0xc8   :  { %v347_v35 = vadd.f32 %v346_v33, %v297_v32 }
  0xca   :  { %v636_v36 = vpack.c.bf16 %v347_v35, %v345_v34 }
  0xcc   :  { %664 = vst [vmem:[%s871_s2 + $0x10] sm:$0xff] %v636_v36   ;;  %v317_v37 = vpop.f32.mrf.mxu2 }
  0xcd   :  { %v366_v38 = vpop.f32.mrf.mxu3 }
  0xce   :  { %v367_v40 = vadd.f32 %v366_v38, %v317_v37  ;;  %v300_v41 = vpop.f32.mrf.mxu0 }
  0xcf   :  { %v349_v42 = vpop.f32.mrf.mxu1 }
  0xd0   :  { %v656_v43 = vpack.c.bf16 %v367_v40, %v365_v39  ;;  %v350_v48 = vadd.f32 %v349_v42, %v300_v41 }
  0xd2   :  { %668 = vst [vmem:[%s871_s2 + $0x30] sm:$0xff] %v656_v43  }
  0xd4   :  { %v320_v44 = vpop.f32.mrf.mxu2 }
  0xd5   :  { %v369_v45 = vpop.f32.mrf.mxu3 }
  0xd6   :  { %v302_v46 = vpop.f32.mrf.mxu0  ;;  %v370_v53 = vadd.f32 %v369_v45, %v320_v44 }
  0xd7   :  { %v351_v47 = vpop.f32.mrf.mxu1 }
  0xd8   :  { %v352_v49 = vadd.f32 %v351_v47, %v302_v46 }
  0xda   :  { %v641_v50 = vpack.c.bf16 %v352_v49, %v350_v48 }
  0xdc   :  { %665 = vst [vmem:[%s871_s2 + $0x18] sm:$0xff] %v641_v50   ;;  %v322_v51 = vpop.f32.mrf.mxu2 }
  0xdd   :  { %v371_v52 = vpop.f32.mrf.mxu3 }
  0xde   :  { %v372_v54 = vadd.f32 %v371_v52, %v322_v51 }
  0xe0   :  { %v661_v55 = vpack.c.bf16 %v372_v54, %v370_v53 }
  0xe2   :  { %669 = vst [vmem:[%s871_s2 + $0x38] sm:$0xff] %v661_v55  }

// kernel: _propagate_bipartite.7
= control target key start
LH: loop header
LB: loop body
LE: loop exit
PB: predicated region body
PF: predicated region fallthrough
CT: control target
= control target key end

     0   :  { %s908_s1 = inlined_call_operand.vmem [shape: bf16[128,128], index: 1, kind: input, shape index: {}]   ;;  %s909_s0 = inlined_call_operand.vmem [shape: bf16[256,128], index: 0, kind: input, shape index: {}]   ;;  %s910_s2 = inlined_call_operand.vmem [shape: bf16[256,128], index: 2, kind: output, shape index: {}]  }
   0x1   :  { %v653_v0 = vld [vmem:[%s908_s1 + $0x38] sm:$0xff]  ;;  %v652_v1 = vld [vmem:[%s908_s1 + $0x30] sm:$0xff]  ;;  %v651_v2 = vld [vmem:[%s908_s1 + $0x28] sm:$0xff] }
   0x2   :  { %276 = vmatpush.bf16.msra.mxu0 %v653_v0  ;;  %749 = vmatpush.bf16.msra.mxu1 %v653_v0  ;;  %v650_v3 = vld [vmem:[%s908_s1 + $0x20] sm:$0xff]  ;;  %v649_v4 = vld [vmem:[%s908_s1 + $0x18] sm:$0xff]  ;;  %v648_v5 = vld [vmem:[%s908_s1 + $0x10] sm:$0xff] }
   0x3   :  { %750 = vmatpush.bf16.msra.mxu2 %v653_v0  ;;  %751 = vmatpush.bf16.msra.mxu3 %v653_v0  ;;  %v647_v6 = vld [vmem:[%s908_s1 + $0x8] sm:$0xff]  ;;  %v646_v7 = vld [vmem:[%s908_s1] sm:$0xff]  ;;  %v632_v16 = vld [vmem:[%s909_s0 + $0x10] sm:$0xff] }
   0x4   :  { %v630_v8 = vld [vmem:[%s909_s0] sm:$0xff]  ;;  %v631_v12 = vld [vmem:[%s909_s0 + $0x8] sm:$0xff]  ;;  %v636_v17 = vld [vmem:[%s909_s0 + $0x30] sm:$0xff] }
   0x5   :  { %v634_v9 = vld [vmem:[%s909_s0 + $0x20] sm:$0xff]  ;;  %v635_v13 = vld [vmem:[%s909_s0 + $0x28] sm:$0xff]  ;;  %v640_v18 = vld [vmem:[%s909_s0 + $0x50] sm:$0xff] }
   0x6   :  { %277 = vmatpush.bf16.msra.mxu0 %v652_v1  ;;  %752 = vmatpush.bf16.msra.mxu1 %v652_v1  ;;  %v638_v10 = vld [vmem:[%s909_s0 + $0x40] sm:$0xff]  ;;  %v639_v14 = vld [vmem:[%s909_s0 + $0x48] sm:$0xff]  ;;  %v644_v19 = vld [vmem:[%s909_s0 + $0x70] sm:$0xff] }
   0x7   :  { %753 = vmatpush.bf16.msra.mxu2 %v652_v1  ;;  %754 = vmatpush.bf16.msra.mxu3 %v652_v1  ;;  %v642_v11 = vld [vmem:[%s909_s0 + $0x60] sm:$0xff]  ;;  %v643_v15 = vld [vmem:[%s909_s0 + $0x68] sm:$0xff]  ;;  %v633_v20 = vld [vmem:[%s909_s0 + $0x18] sm:$0xff] }
   0x8   :  { %v637_v21 = vld [vmem:[%s909_s0 + $0x38] sm:$0xff] }
   0x9   :  { %v641_v22 = vld [vmem:[%s909_s0 + $0x58] sm:$0xff] }
   0xa   :  { %278 = vmatpush.bf16.msra.mxu0 %v651_v2  ;;  %755 = vmatpush.bf16.msra.mxu1 %v651_v2  ;;  %v645_v23 = vld [vmem:[%s909_s0 + $0x78] sm:$0xff] }
   0xb   :  { %756 = vmatpush.bf16.msra.mxu2 %v651_v2  ;;  %757 = vmatpush.bf16.msra.mxu3 %v651_v2 }
   0xe   :  { %279 = vmatpush.bf16.msra.mxu0 %v650_v3  ;;  %758 = vmatpush.bf16.msra.mxu1 %v650_v3 }
   0xf   :  { %759 = vmatpush.bf16.msra.mxu2 %v650_v3  ;;  %760 = vmatpush.bf16.msra.mxu3 %v650_v3 }
  0x12   :  { %280 = vmatpush.bf16.msra.mxu0 %v649_v4  ;;  %761 = vmatpush.bf16.msra.mxu1 %v649_v4 }
  0x13   :  { %762 = vmatpush.bf16.msra.mxu2 %v649_v4  ;;  %763 = vmatpush.bf16.msra.mxu3 %v649_v4 }
  0x16   :  { %281 = vmatpush.bf16.msra.mxu0 %v648_v5  ;;  %764 = vmatpush.bf16.msra.mxu1 %v648_v5 }
  0x17   :  { %765 = vmatpush.bf16.msra.mxu2 %v648_v5  ;;  %766 = vmatpush.bf16.msra.mxu3 %v648_v5 }
  0x1a   :  { %282 = vmatpush.bf16.msra.mxu0 %v647_v6  ;;  %767 = vmatpush.bf16.msra.mxu1 %v647_v6 }
  0x1b   :  { %768 = vmatpush.bf16.msra.mxu2 %v647_v6  ;;  %769 = vmatpush.bf16.msra.mxu3 %v647_v6 }
  0x1e   :  { %283 = vmatpush.bf16.msra.mxu0 %v646_v7  ;;  %770 = vmatpush.bf16.msra.mxu1 %v646_v7 }
  0x1f   :  { %771 = vmatpush.bf16.msra.mxu2 %v646_v7  ;;  %772 = vmatpush.bf16.msra.mxu3 %v646_v7 }
  0x21   :  { %284 = vmatmul.bf16.vlgmr.msra.gmra.mxu0 %v630_v8  ;;  %304 = vmatmul.bf16.vlgmr.msra.gmra.mxu1 %v634_v9 }
  0x22   :  { %324 = vmatmul.bf16.vlgmr.msra.gmra.mxu2 %v638_v10  ;;  %344 = vmatmul.bf16.vlgmr.msra.gmra.mxu3 %v642_v11 }
  0x31   :  { %289 = vmatmul.bf16.gmra.mxu0 %v631_v12  ;;  %309 = vmatmul.bf16.gmra.mxu1 %v635_v13 }
  0x32   :  { %329 = vmatmul.bf16.gmra.mxu2 %v639_v14  ;;  %349 = vmatmul.bf16.gmra.mxu3 %v643_v15 }
  0x41   :  { %294 = vmatmul.bf16.gmra.mxu0 %v632_v16  ;;  %314 = vmatmul.bf16.gmra.mxu1 %v636_v17 }
  0x42   :  { %334 = vmatmul.bf16.gmra.mxu2 %v640_v18  ;;  %354 = vmatmul.bf16.gmra.mxu3 %v644_v19 }
  0x51   :  { %299 = vmatmul.bf16.gmra.mxu0 %v633_v20  ;;  %319 = vmatmul.bf16.gmra.mxu1 %v637_v21 }
  0x52   :  { %339 = vmatmul.bf16.gmra.mxu2 %v641_v22  ;;  %359 = vmatmul.bf16.gmra.mxu3 %v645_v23 }
  0x9e   :  { %v285_v24 = vpop.f32.mrf.mxu0  ;;  %v305_v25 = vpop.f32.mrf.mxu1 }
  0xa5   :  { %v325_v26 = vpop.f32.mrf.mxu2  ;;  %v345_v27 = vpop.f32.mrf.mxu3 }
  0xa6   :  { %v287_v28 = vpop.f32.mrf.mxu0  ;;  %v307_v29 = vpop.f32.mrf.mxu1 }
  0xa7   :  { %v657_v30 = vpack.c.bf16 %v287_v28, %v285_v24  ;;  %v677_v31 = vpack.c.bf16 %v307_v29, %v305_v25 }
  0xa9   :  { %658 = vst [vmem:[%s910_s2] sm:$0xff] %v657_v30  }
  0xaa   :  { %737 = vst [vmem:[%s910_s2 + $0x20] sm:$0xff] %v677_v31  }
  0xad   :  { %v327_v32 = vpop.f32.mrf.mxu2  ;;  %v347_v33 = vpop.f32.mrf.mxu3 }
  0xae   :  { %v697_v34 = vpack.c.bf16 %v327_v32, %v325_v26  ;;  %v717_v35 = vpack.c.bf16 %v347_v33, %v345_v27  ;;  %v290_v36 = vpop.f32.mrf.mxu0  ;;  %v310_v37 = vpop.f32.mrf.mxu1 }
  0xb0   :  { %741 = vst [vmem:[%s910_s2 + $0x40] sm:$0xff] %v697_v34  }
  0xb1   :  { %745 = vst [vmem:[%s910_s2 + $0x60] sm:$0xff] %v717_v35  }
  0xb5   :  { %v330_v38 = vpop.f32.mrf.mxu2  ;;  %v350_v39 = vpop.f32.mrf.mxu3 }
  0xb6   :  { %v292_v40 = vpop.f32.mrf.mxu0  ;;  %v312_v41 = vpop.f32.mrf.mxu1 }
  0xb7   :  { %v662_v42 = vpack.c.bf16 %v292_v40, %v290_v36  ;;  %v682_v43 = vpack.c.bf16 %v312_v41, %v310_v37 }
  0xb9   :  { %734 = vst [vmem:[%s910_s2 + $0x8] sm:$0xff] %v662_v42  }
  0xba   :  { %738 = vst [vmem:[%s910_s2 + $0x28] sm:$0xff] %v682_v43  }
  0xbd   :  { %v332_v44 = vpop.f32.mrf.mxu2  ;;  %v352_v45 = vpop.f32.mrf.mxu3 }
  0xbe   :  { %v702_v46 = vpack.c.bf16 %v332_v44, %v330_v38  ;;  %v722_v47 = vpack.c.bf16 %v352_v45, %v350_v39  ;;  %v295_v48 = vpop.f32.mrf.mxu0  ;;  %v315_v49 = vpop.f32.mrf.mxu1 }
  0xc0   :  { %742 = vst [vmem:[%s910_s2 + $0x48] sm:$0xff] %v702_v46  }
  0xc1   :  { %746 = vst [vmem:[%s910_s2 + $0x68] sm:$0xff] %v722_v47  }
  0xc5   :  { %v335_v50 = vpop.f32.mrf.mxu2  ;;  %v355_v51 = vpop.f32.mrf.mxu3 }
  0xc6   :  { %v297_v52 = vpop.f32.mrf.mxu0  ;;  %v317_v53 = vpop.f32.mrf.mxu1 }
  0xc7   :  { %v667_v54 = vpack.c.bf16 %v297_v52, %v295_v48  ;;  %v687_v55 = vpack.c.bf16 %v317_v53, %v315_v49 }
  0xc9   :  { %735 = vst [vmem:[%s910_s2 + $0x10] sm:$0xff] %v667_v54  }
  0xca   :  { %739 = vst [vmem:[%s910_s2 + $0x30] sm:$0xff] %v687_v55  }
  0xcd   :  { %v337_v56 = vpop.f32.mrf.mxu2  ;;  %v357_v57 = vpop.f32.mrf.mxu3 }
  0xce   :  { %v707_v58 = vpack.c.bf16 %v337_v56, %v335_v50  ;;  %v727_v59 = vpack.c.bf16 %v357_v57, %v355_v51  ;;  %v300_v60 = vpop.f32.mrf.mxu0  ;;  %v320_v61 = vpop.f32.mrf.mxu1 }
  0xd0   :  { %743 = vst [vmem:[%s910_s2 + $0x50] sm:$0xff] %v707_v58  }
  0xd1   :  { %747 = vst [vmem:[%s910_s2 + $0x70] sm:$0xff] %v727_v59  }
  0xd5   :  { %v340_v62 = vpop.f32.mrf.mxu2  ;;  %v360_v63 = vpop.f32.mrf.mxu3 }
  0xd6   :  { %v302_v0 = vpop.f32.mrf.mxu0  ;;  %v322_v1 = vpop.f32.mrf.mxu1 }
  0xd7   :  { %v672_v2 = vpack.c.bf16 %v302_v0, %v300_v60  ;;  %v692_v3 = vpack.c.bf16 %v322_v1, %v320_v61 }
  0xd9   :  { %736 = vst [vmem:[%s910_s2 + $0x18] sm:$0xff] %v672_v2  }
  0xda   :  { %740 = vst [vmem:[%s910_s2 + $0x38] sm:$0xff] %v692_v3  }
  0xdd   :  { %v342_v4 = vpop.f32.mrf.mxu2  ;;  %v362_v5 = vpop.f32.mrf.mxu3 }
  0xde   :  { %v712_v6 = vpack.c.bf16 %v342_v4, %v340_v62  ;;  %v732_v7 = vpack.c.bf16 %v362_v5, %v360_v63 }
  0xe0   :  { %744 = vst [vmem:[%s910_s2 + $0x58] sm:$0xff] %v712_v6  }
  0xe1   :  { %748 = vst [vmem:[%s910_s2 + $0x78] sm:$0xff] %v732_v7  }

</bundles_post_ra>
